<compile_context>
chip_gen: v6e
topology: v6e:2x2x1
jax: 0.10.0
libtpu: 0.0.40
codegen_flags: <defaults>
</compile_context>

<pallas_src>
import jax
import jax.numpy as jnp
from jax import lax
from jax.experimental import pallas as pl
from jax.experimental.pallas import tpu as pltpu

_LANES = 128


def _make_kernel(*, n_rows, tile_r, acc_rows, blocks_per_shard, need_row_mask,
                 approx_reciprocal):
    """Builds the kernel body; all parameters are static Python ints/bools."""
    fold = tile_r // acc_rows

    def kernel(yt_ref, yp_ref, m_ref, out_ref, acc_ref):
        c = pl.program_id(0)          # shard (TensorCore) axis
        i = pl.program_id(1)          # row-block (reduction) axis

        @pl.when(i == 0)
        def _():
            acc_ref[...] = jnp.zeros_like(acc_ref)

        yt = yt_ref[...].astype(jnp.float32)
        yp = yp_ref[...].astype(jnp.float32)
        m = m_ref[...].astype(jnp.float32)

        num = jnp.abs(yt - yp)
        den = jnp.abs(yt)
        if approx_reciprocal:
            # Single EUP vrcp pass; rcp(0) = +inf so the isfinite() cleanup
            # below preserves the NaN/+inf -> 0 semantics.
            ratio = num * pl.reciprocal(den, approx=True)
        else:
            ratio = num / den
        # ape[ape != ape] = 0 and ape[ape == +inf] = 0  <=>  keep finite values
        # (-inf cannot occur: ratio is built from abs()).
        contrib = jnp.where(jnp.isfinite(ratio), ratio, 0.0) * m

        if need_row_mask:
            # Ragged / overhanging row blocks: zero any row whose global index
            # is past the true row count (covers the partial last block and any
            # fully out-of-range block of the last shard; those blocks are
            # clamped to a valid block in the index_map, so their data is
            # merely re-read and then zeroed here).
            blk = c * blocks_per_shard + i
            valid = n_rows - blk * tile_r
            row_ids = lax.broadcasted_iota(jnp.int32, (tile_r, 1), 0)
            contrib = jnp.where(row_ids < valid, contrib, 0.0)

        if fold > 1:
            # Fold (tile_r, C) -> (acc_rows, C) with pure per-vreg VPU adds
            # (no per-step cross-lane XLU work in the streaming loop).
            contrib = contrib.reshape(fold, acc_rows, -1).sum(axis=0)
        acc_ref[...] += contrib

        @pl.when(i == blocks_per_shard - 1)
        def _():
            out_ref[...] = acc_ref[...]

    return kernel


def nbeats_mape_pallas(y_true, y_pred, mask, *, block_rows=None,
                       target_block_bytes=2 << 20, num_shards=1,
                       core_parallel=False, approx_reciprocal=False):
    """Masked MAPE (scalar float32) for arrays of any identical shape.

    block_rows:        optional override of the row-tile size (testing/tuning).
    target_block_bytes ~2 MiB/input/buffer by default (close to HBM roofline).
    num_shards / core_parallel: set (2, True) on v7x to use both TensorCores;
                       keep (1, False) on single-core v5e/v6e.
    approx_reciprocal: use the EUP approximate reciprocal (recommended on v7x
                       where the exact divide can become the binding unit).
    """
    assert y_true.shape == y_pred.shape == mask.shape
    total_count = y_true.size
    n = total_count

    if mask.dtype == jnp.bool_:
        mask = mask.astype(jnp.int8)       # 1 B/elem mask stream

    # ---- choose a 2-D (rows, cols) view, avoiding data copies when possible --
    last = y_true.shape[-1] if y_true.ndim else 1
    lead = n // last if last else 0
    if n % _LANES == 0:
        # Fully lane-dense repack; reshape is a free bitcast (no HBM copy).
        rows, cols, pad = n // _LANES, _LANES, 0
    elif (y_true.ndim >= 2 and lead >= 8 and last >= 64
          and last * 4 * 8 <= target_block_bytes):
        # Stream the natural (leading, last-dim) layout directly (no copy);
        # the ragged row tail is handled inside the kernel.
        rows, cols, pad = lead, last, 0
    else:
        # Rare fallback (tiny or degenerate shapes): pad the flat tail up to a
        # lane multiple. Only path that costs an extra HBM copy.
        rows, cols = pl.cdiv(n, _LANES), _LANES
        pad = rows * _LANES - n

    def _as2d(x):
        x = x.reshape(-1)
        if pad:
            x = jnp.pad(x, (0, pad))
        return x.reshape(rows, cols)

    # Padded elements give 0/0 -> NaN -> 0 with mask 0, and total_count stays
    # the unpadded element count, so the mean is unbiased.
    yt2, yp2, m2 = _as2d(y_true), _as2d(y_pred), _as2d(mask)

    # ---- row-tile selection --------------------------------------------------
    cols_pad = pl.cdiv(cols, _LANES) * _LANES
    row_bytes = cols_pad * 4
    if block_rows is not None:
        max_rows = max(8, (block_rows // 8) * 8)
    else:
        max_rows = max(8, (target_block_bytes // row_bytes) // 8 * 8)
    # Sub-32-bit mask dtypes pack along sublanes: keep the row tile a multiple
    # of the packed sublane tile (32 for int8, 16 for bf16).
    sub_mult = max(8, (4 // jnp.dtype(m2.dtype).itemsize) * 8)
    if max_rows >= sub_mult:
        max_rows = (max_rows // sub_mult) * sub_mult

    if rows <= max_rows:
        tile_r = rows                      # single full-dim row block
    else:
        tile_r = max_rows                  # multiple of 8 (and of sub_mult)
    acc_rows = 8 if tile_r % 8 == 0 else tile_r

    blocks_total = pl.cdiv(rows, tile_r)
    num_shards = max(1, min(int(num_shards), blocks_total))
    if acc_rows % 8 != 0:
        num_shards = 1                     # keep the output block well-formed
    blocks_per_shard = pl.cdiv(blocks_total, num_shards)
    need_row_mask = (num_shards * blocks_per_shard * tile_r) != rows

    last_block = blocks_total - 1

    def in_index(c, i):
        # Clamp so an overhanging shard never requests a fully out-of-bounds
        # block; the kernel's row mask zeroes its contribution.
        return (jnp.minimum(c * blocks_per_shard + i, last_block), 0)

    in_spec = pl.BlockSpec((tile_r, cols), in_index)
    out_spec = pl.BlockSpec((acc_rows, cols), lambda c, i: (c, 0))

    kernel = _make_kernel(n_rows=rows, tile_r=tile_r, acc_rows=acc_rows,
                          blocks_per_shard=blocks_per_shard,
                          need_row_mask=need_row_mask,
                          approx_reciprocal=approx_reciprocal)

    sem0 = (pltpu.CORE_PARALLEL if (core_parallel and num_shards > 1)
            else "arbitrary")

    bytes_accessed = (yt2.size * yt2.dtype.itemsize
                      + yp2.size * yp2.dtype.itemsize
                      + m2.size * m2.dtype.itemsize
                      + num_shards * acc_rows * cols * 4)
    cost = pl.CostEstimate(flops=8 * n, transcendentals=n,
                           bytes_accessed=int(bytes_accessed))

    partials = pl.pallas_call(
        kernel,
        out_shape=jax.ShapeDtypeStruct((num_shards * acc_rows, cols),
                                       jnp.float32),
        grid_spec=pltpu.PrefetchScalarGridSpec(
            num_scalar_prefetch=0,
            grid=(num_shards, blocks_per_shard),
            in_specs=[in_spec, in_spec, in_spec],
            out_specs=out_spec,
            scratch_shapes=[pltpu.VMEM((acc_rows, cols), jnp.float32)],
        ),
        compiler_params=pltpu.CompilerParams(
            dimension_semantics=(sem0, "arbitrary"),
            vmem_limit_bytes=32 * 1024 * 1024,
        ),
        cost_estimate=cost,
    )(yt2, yp2, m2)

    # Tiny final reduction (<= num_shards*8 x cols) + scaling done in XLA.
    return 100.0 * jnp.sum(partials) / jnp.float32(total_count)


def nbeats_mape_ref(y_true, y_pred, mask):
    ape = jnp.abs(y_true - y_pred) / jnp.abs(y_true)
    ape = jnp.where(jnp.isnan(ape) | (ape == jnp.inf), 0.0, ape)
    return 100.0 * jnp.mean(ape * mask.astype(jnp.float32))


if __name__ == "__main__":
    key = jax.random.PRNGKey(0)

    def make_case(key, shape, mask_dtype=jnp.float32):
        k1, k2, k3 = jax.random.split(key, 3)
        y_true = jax.random.normal(k1, shape, dtype=jnp.float32)
        y_pred = y_true + 0.1 * jax.random.normal(k2, shape, dtype=jnp.float32)
        mask = (jax.random.uniform(k3, shape) > 0.3).astype(mask_dtype)
        # Exercise the NaN (0/0) and +inf (x/0) branches.
        y_true = y_true.at[0, :4].set(0.0)
        y_pred = y_pred.at[0, 0].set(0.0)   # 0/0 -> NaN -> 0
        # y_true[0,1:4] == 0, y_pred != 0   # x/0 -> +inf -> 0
        return y_true, y_pred, mask

    k_a, k_b, k_c = jax.random.split(key, 3)

    # Case A: zero-copy natural-layout path with a ragged last row block
    # (19 rows, tile of 8 rows -> 3 blocks, last has 3 valid rows).
    yt_a, yp_a, m_a = make_case(k_a, (19, 96))
    res_a = nbeats_mape_pallas(yt_a, yp_a, m_a, block_rows=8)
    jax.block_until_ready(res_a)
    exp_a = nbeats_mape_ref(yt_a, yp_a, m_a)
    assert jnp.allclose(res_a, exp_a, rtol=1e-5, atol=1e-5), (res_a, exp_a)

    # Case B: lane-aligned zero-copy path (384 = 3*128 elements) with the
    # approximate reciprocal (looser tolerance: ~2^-12 relative error).
    yt_b, yp_b, m_b = make_case(k_b, (16, 24))
    res_b = nbeats_mape_pallas(yt_b, yp_b, m_b, approx_reciprocal=True)
    jax.block_until_ready(res_b)
    exp_b = nbeats_mape_ref(yt_b, yp_b, m_b)
    assert jnp.allclose(res_b, exp_b, rtol=2e-3, atol=2e-3), (res_b, exp_b)

    # Case C: tiny non-aligned input -> tail-pad fallback, bool mask streamed
    # as int8.
    yt_c, yp_c, m_c = make_case(k_c, (4, 100), mask_dtype=jnp.bool_)
    res_c = nbeats_mape_pallas(yt_c, yp_c, m_c)
    jax.block_until_ready(res_c)
    exp_c = nbeats_mape_ref(yt_c, yp_c, m_c)
    assert jnp.allclose(res_c, exp_c, rtol=1e-5, atol=1e-5), (res_c, exp_c)

    print("KERNEL_OK")
</pallas_src>

<mosaic_0001>
module attributes {stable_mosaic.version = 11 : i64} {
  func.func @kernel(%arg0: i32, %arg1: i32, %arg2: memref<8x96xf32, #tpu.memory_space<vmem>>, %arg3: memref<8x96xf32, #tpu.memory_space<vmem>>, %arg4: memref<8x96xf32, #tpu.memory_space<vmem>>, %arg5: memref<8x96xf32, #tpu.memory_space<vmem>>, %arg6: memref<8x96xf32, #tpu.memory_space<vmem>>) attributes {dimension_semantics = [#tpu.dimension_semantics<arbitrary>, #tpu.dimension_semantics<arbitrary>], iteration_bounds = array<i64: 1, 3>, scalar_prefetch = 0 : i64, scratch_operands = 1 : i64, tpu.core_type = #tpu.core_type<tc>, window_params = [{transform_indices = @transform_0, window_bounds = array<i64: 8, 96>}, {transform_indices = @transform_1, window_bounds = array<i64: 8, 96>}, {transform_indices = @transform_2, window_bounds = array<i64: 8, 96>}, {transform_indices = @transform_3, window_bounds = array<i64: 8, 96>}]} {
    %c0_i32 = arith.constant 0 : i32
    %0 = arith.cmpi eq, %arg1, %c0_i32 : i32
    %1 = arith.extui %0 : i1 to i32
    %c0_i32_0 = arith.constant 0 : i32
    %2 = arith.cmpi ne, %1, %c0_i32_0 : i32
    scf.if %2 {
      %cst_13 = arith.constant 0.000000e+00 : f32
      %32 = vector.broadcast %cst_13 : f32 to vector<8x96xf32>
      %c0_14 = arith.constant 0 : index
      %c0_15 = arith.constant 0 : index
      %33 = vector.load %arg6[%c0_14, %c0_15] : memref<8x96xf32, #tpu.memory_space<vmem>>, vector<8x96xf32>
      tpu.vector_store %arg6[%c0_14, %c0_15], %32 {strides = array<i32>} : memref<8x96xf32, #tpu.memory_space<vmem>>, vector<8x96xf32>,
    } else {
    }
    %c0 = arith.constant 0 : index
    %c0_1 = arith.constant 0 : index
    %3 = vector.load %arg2[%c0, %c0_1] : memref<8x96xf32, #tpu.memory_space<vmem>>, vector<8x96xf32>
    %c0_2 = arith.constant 0 : index
    %c0_3 = arith.constant 0 : index
    %4 = vector.load %arg3[%c0_2, %c0_3] : memref<8x96xf32, #tpu.memory_space<vmem>>, vector<8x96xf32>
    %c0_4 = arith.constant 0 : index
    %c0_5 = arith.constant 0 : index
    %5 = vector.load %arg4[%c0_4, %c0_5] : memref<8x96xf32, #tpu.memory_space<vmem>>, vector<8x96xf32>
    %6 = arith.subf %3, %4 : vector<8x96xf32>
    %7 = math.absf %6 : vector<8x96xf32>
    %8 = math.absf %3 : vector<8x96xf32>
    %9 = arith.divf %7, %8 : vector<8x96xf32>
    %10 = tpu.weird %9 : vector<8x96xf32> -> vector<8x96xi1>
    %cst = arith.constant dense<true> : vector<8x96xi1>
    %11 = arith.xori %10, %cst : vector<8x96xi1>
    %cst_6 = arith.constant 0.000000e+00 : f32
    %12 = vector.broadcast %cst_6 : f32 to vector<8x96xf32>
    %13 = arith.select %11, %9, %12 : vector<8x96xi1>, vector<8x96xf32>
    %14 = arith.mulf %13, %5 : vector<8x96xf32>
    %c3_i32 = arith.constant 3 : i32
    %15 = arith.muli %arg0, %c3_i32 : i32
    %16 = arith.addi %15, %arg1 : i32
    %c8_i32 = arith.constant 8 : i32
    %17 = arith.muli %16, %c8_i32 : i32
    %c19_i32 = arith.constant 19 : i32
    %18 = arith.subi %c19_i32, %17 : i32
    %19 = tpu.iota {dimensions = array<i32: 0>} : vector<8x1xi32>
    %20 = vector.broadcast %18 : i32 to vector<8x1xi32>
    %21 = arith.cmpi slt, %19, %20 : vector<8x1xi32>
    %cst_7 = arith.constant 0.000000e+00 : f32
    %22 = vector.shape_cast %21 : vector<8x1xi1> to vector<8x1xi1>
    %23 = vector.broadcast %22 : vector<8x1xi1> to vector<8x96xi1>
    %24 = vector.broadcast %cst_7 : f32 to vector<8x96xf32>
    %25 = arith.select %23, %14, %24 : vector<8x96xi1>, vector<8x96xf32>
    %c0_8 = arith.constant 0 : index
    %c0_9 = arith.constant 0 : index
    %26 = vector.load %arg6[%c0_8, %c0_9] : memref<8x96xf32, #tpu.memory_space<vmem>>, vector<8x96xf32>
    %27 = arith.addf %26, %25 : vector<8x96xf32>
    %c0_10 = arith.constant 0 : index
    %c0_11 = arith.constant 0 : index
    %28 = vector.load %arg6[%c0_10, %c0_11] : memref<8x96xf32, #tpu.memory_space<vmem>>, vector<8x96xf32>
    tpu.vector_store %arg6[%c0_10, %c0_11], %27 {strides = array<i32>} : memref<8x96xf32, #tpu.memory_space<vmem>>, vector<8x96xf32>,
    %c2_i32 = arith.constant 2 : i32
    %29 = arith.cmpi eq, %arg1, %c2_i32 : i32
    %30 = arith.extui %29 : i1 to i32
    %c0_i32_12 = arith.constant 0 : i32
    %31 = arith.cmpi ne, %30, %c0_i32_12 : i32
    scf.if %31 {
      %c0_13 = arith.constant 0 : index
      %c0_14 = arith.constant 0 : index
      %32 = vector.load %arg6[%c0_13, %c0_14] : memref<8x96xf32, #tpu.memory_space<vmem>>, vector<8x96xf32>
      %c0_15 = arith.constant 0 : index
      %c0_16 = arith.constant 0 : index
      %33 = vector.load %arg5[%c0_15, %c0_16] : memref<8x96xf32, #tpu.memory_space<vmem>>, vector<8x96xf32>
      tpu.vector_store %arg5[%c0_15, %c0_16], %32 {strides = array<i32>} : memref<8x96xf32, #tpu.memory_space<vmem>>, vector<8x96xf32>,
    } else {
    }
    return
  }
  func.func @transform_0(%arg0: i32, %arg1: i32) -> (i32, i32) {
    %c3_i32 = arith.constant 3 : i32
    %0 = arith.muli %arg0, %c3_i32 : i32
    %1 = arith.addi %0, %arg1 : i32
    %c2_i32 = arith.constant 2 : i32
    %2 = arith.minsi %1, %c2_i32 : i32
    %c0_i32 = arith.constant 0 : i32
    %c0_i32_0 = arith.constant 0 : i32
    return %2, %c0_i32 : i32, i32
  }
  func.func @transform_1(%arg0: i32, %arg1: i32) -> (i32, i32) {
    %c3_i32 = arith.constant 3 : i32
    %0 = arith.muli %arg0, %c3_i32 : i32
    %1 = arith.addi %0, %arg1 : i32
    %c2_i32 = arith.constant 2 : i32
    %2 = arith.minsi %1, %c2_i32 : i32
    %c0_i32 = arith.constant 0 : i32
    %c0_i32_0 = arith.constant 0 : i32
    return %2, %c0_i32 : i32, i32
  }
  func.func @transform_2(%arg0: i32, %arg1: i32) -> (i32, i32) {
    %c3_i32 = arith.constant 3 : i32
    %0 = arith.muli %arg0, %c3_i32 : i32
    %1 = arith.addi %0, %arg1 : i32
    %c2_i32 = arith.constant 2 : i32
    %2 = arith.minsi %1, %c2_i32 : i32
    %c0_i32 = arith.constant 0 : i32
    %c0_i32_0 = arith.constant 0 : i32
    return %2, %c0_i32 : i32, i32
  }
  func.func @transform_3(%arg0: i32, %arg1: i32) -> (i32, i32) {
    %c0_i32 = arith.constant 0 : i32
    %c0_i32_0 = arith.constant 0 : i32
    return %arg0, %c0_i32 : i32, i32
  }
}

</mosaic_0001>

<bundles_post_ra>
// kernel: tpu_custom_call.1
= control target key start
LH: loop header
LB: loop body
LE: loop exit
PB: predicated region body
PF: predicated region fallthrough
CT: control target
= control target key end

     0   :  { %8 = vsyncpa [#allocation4], 0  ;;  %s912_s0 = inlined_call_operand.hbm [shape: f32[19,96], index: 0, kind: input, shape index: {}]   ;;  %s913_s1 = inlined_call_operand.hbm [shape: f32[19,96], index: 1, kind: input, shape index: {}]   ;;  %s914_s2 = inlined_call_operand.hbm [shape: f32[19,96], index: 2, kind: input, shape index: {}]   ;;  %s915_s3 = inlined_call_operand.hbm [shape: f32[8,96], index: 3, kind: output, shape index: {}]  }
   0x1   :  { %10 = vsyncpa [#allocation4 + $0x1], 0 }
   0x2   :  { %11 = vsyncpa [#allocation7], 0 }
   0x3   :  { %13 = vsyncpa [#allocation7 + $0x1], 0 }
   0x4   :  { %14 = vsyncpa [#allocation5], 0  ;;  %s752_s12 = smov 0   ;;  %s754_s13 = smov 0  }
   0x5   :  { %s756_s14 = smov 0   ;;  %s758_s15 = smov 0  }
   0x6   :  { %s760_s16 = smov 0   ;;  %s762_s17 = smov 0  }
   0x7 LB: > { %s781_s18 = sadd.s32 4294967295, %s724_s17   ;;  %s29_s19 = sadd.s32 1, %s720_s16  ;;  %s724_s17 = sphi %s762_s17, %s20_s17   ;;  %s720_s16 = sphi %s760_s16, %s923_s16   ;;  %s716_s15 = sphi %s758_s15, %s922_s15   ;;  %s712_s14 = sphi %s756_s14, %s921_s14   ;;  %s708_s13 = sphi %s754_s13, %s920_s13   ;;  %s704_s12 = sphi %s752_s12, %s919_s12  }
   0x8   : > { %p30_p0 = scmp.ge.s32.totalorder %s29_s19, 3  ;;  %p38_p1 = scmp.lt.s32.totalorder %s720_s16, 2 }
   0x9   : > { %s47_s20 = sadd.s32 1, %s712_s14  ;;  %p54_p2 = scmp.ne.s32.totalorder %s712_s14, %s708_s13 }
   0xa   : > { %s925_s19 = smov (%p30_p0, %s29_s19), 0  ;;  %p55_p4 = scmp.eq.s32.totalorder %s724_s17, 0 }
   0xb   : > { %s39_s21 = scalar_select %p38_p1, %s720_s16, 2 }
   0xc   : > { %p42_p3 = scmp.lt.s32.totalorder %s925_s19, 2  ;;  %p60_p5 = scmp.ne.s32.totalorder %s708_s13, %s704_s12 }
   0xd   : > { %p61_p6 = scmp.eq.s32.totalorder %s781_s18, 0  ;;  %p56_p7 = por %p55_p4, %p54_p2 }
   0xe   : > { %s43_s22 = scalar_select %p42_p3, %s925_s19, 2 }
   0xf   : > { %p796_p8 = por %p61_p6, %p60_p5  ;;  %p502_p10 = scmp.lt.s32.totalorder %s724_s17, 3 }
  0x10   : > { %s44_s24 = ssub.s32 %s39_s21, %s43_s22  ;;  %s178_s25 = sand.u32 1, %s712_s14  }
  0x11   : > { %p45_p9 = scmp.eq.s32.totalorder %s44_s24, 0  ;;  %s802_s26 = sshll.u32 %s39_s21, 7 }
  0x12   : > { %s809_s28 = sshll.u32 %s178_s25, 3  ;;  %p811_p11 = pnand %p502_p10, %p56_p7 }
  0x13   : > { %s805_s27 = scalar_select %p45_p9, %s712_s14, %s47_s20  }
  0x14   : > { %s200_s30 = sand.u32 1, %s724_s17   ;;  %s213_s6 = scalar_lea.hbm %s913_s1, %s802_s26 }
  0x15   : > { %s204_s7 = scalar_lea.vmem [#allocation6], %s809_s28  ;;  %p471_p12 = scmp.ge.s32.totalorder %s724_s17, 1 }
  0x16   : > { %s215_s8 = sshll.u32 %s204_s7, 4  ;;  %s822_s9 = scalar_lea.sflag [#allocation7], %s200_s30  ;;  %s216_s8 = int_to_ptr.vmem [resolvable:$true] %s215_s8 }
  0x17   : > { %p560_p13 = pneg %p811_p11  ;;  %s571_s10 = scalar_lea.vmem %s216_s8, 128 }
  0x18   : > { %p572_p0 = scmp.ne.s32.totalorder %s216_s8, %s571_s10  ;;  %s726_s11 = smov [#allocation6]  }
  0x19   : > { %s576_s12 = sshll.u32 %s726_s11, 4  ;;  %s577_s12 = int_to_ptr.vmem [resolvable:$false] %s576_s12 }
  0x1a   : > { %p574_p1 = pnand %p572_p0, %p560_p13  ;;  %s578_s20 = scalar_lea.vmem %s577_s12, 256 }
  0x1b   : > { %p579_p3 = scmp.lt.s32.totalorder %s216_s8, %s577_s12  ;;  %p580_p4 = scmp.lt.s32.totalorder %s578_s20, %s571_s10 }
  0x1c   : > { %p575_p2 = pneg %p574_p1 }
  0x1d   : > { %p581_p5 = por %p580_p4, %p579_p3 }
  0x1f   : > { %p582_p6 = pnand %p581_p5, %p575_p2 }
  0x21   : > { %585 = shalt.err (!%p582_p6)
}
  0x22   : > { %498 = dma.hbm_to_vmem [thread:$0]  (!%p811_p11), %s213_s6, 128, %s216_s8, %s822_s9  }
  0x23   : > { %p242_p7 = scmp.lt.s32.totalorder %s724_s17, 4  ;;  %s191_s30 = scalar_lea.hbm %s912_s0, %s802_s26 }
  0x24   : > { %s182_s4 = scalar_lea.vmem [#allocation3], %s809_s28  ;;  %s179_s7 = scalar_lea.sflag [#allocation4], %s178_s25 }
  0x25   : > { %p835_p9 = pnand %p471_p12, %p242_p7  ;;  %s193_s5 = sshll.u32 %s182_s4, 4  ;;  %s194_s5 = int_to_ptr.vmem [resolvable:$true] %s193_s5 }
  0x26   : > { %s599_s10 = scalar_lea.vmem %s194_s5, 128  ;;  %s727_s6 = smov [#allocation3]  }
  0x27   : > { %p600_p10 = scmp.ne.s32.totalorder %s194_s5, %s599_s10  ;;  %s604_s8 = sshll.u32 %s727_s6, 4  ;;  %s605_s8 = int_to_ptr.vmem [resolvable:$false] %s604_s8 }
  0x28   : > { %s606_s11 = scalar_lea.vmem %s605_s8, 256  ;;  %p607_p12 = scmp.lt.s32.totalorder %s194_s5, %s605_s8 }
  0x29   : > { %p602_p0 = pnand %p600_p10, %p560_p13  ;;  %p608_p2 = scmp.lt.s32.totalorder %s606_s11, %s599_s10 }
  0x2b   : > { %p603_p1 = pneg %p602_p0  ;;  %p609_p3 = por %p608_p2, %p607_p12 }
  0x2d   : > { %p610_p4 = pnand %p609_p3, %p603_p1 }
  0x2f   : > { %613 = shalt.err (!%p610_p4)
}
  0x30   : > { %495 = dma.hbm_to_vmem [thread:$0]  (!%p811_p11), %s191_s30, 128, %s194_s5, %s179_s7  }
  0x31   : > { %s235_s20 = scalar_lea.hbm %s914_s2, %s802_s26  ;;  %s226_s22 = scalar_lea.vmem [#allocation8], %s809_s28 }
  0x32   : > { %s237_s24 = sshll.u32 %s226_s22, 4  ;;  %s728_s10 = smov [#allocation8]   ;;  %s238_s24 = int_to_ptr.vmem [resolvable:$true] %s237_s24 }
  0x33   : > { %s627_s4 = scalar_lea.vmem %s238_s24, 128  ;;  %s632_s6 = sshll.u32 %s728_s10, 4  ;;  %s633_s6 = int_to_ptr.vmem [resolvable:$false] %s632_s6 }
  0x34   : > { %p628_p5 = scmp.ne.s32.totalorder %s238_s24, %s627_s4  ;;  %s634_s8 = scalar_lea.vmem %s633_s6, 256 }
  0x35   : > { %p635_p10 = scmp.lt.s32.totalorder %s238_s24, %s633_s6  ;;  %p636_p0 = scmp.lt.s32.totalorder %s634_s8, %s627_s4 }
  0x36   : > { %p630_p6 = pnand %p628_p5, %p560_p13 }
  0x37   : > { %p637_p1 = por %p636_p0, %p635_p10 }
  0x38   : > { %p631_p7 = pneg %p630_p6 }
  0x3a   : > { %p638_p12 = pnand %p637_p1, %p631_p7 }
  0x3c   : > { %641 = shalt.err (!%p638_p12)
}
  0x3d   : > { %501 = dma.hbm_to_vmem [thread:$0]  (!%p811_p11), %s235_s20, 128, %s238_s24, %s822_s9  }
  0x3e   : > { %246 = sbr.rel (%p835_p9) target bundleno = 131 (0x83), region = 32  ;;  %s248_s26 = sand.u32 (!%p835_p9), 1, %s708_s13  }
  0x3f   : > { %s865_s28 = sshll.u32 (!%p835_p9), %s248_s26, 3  ;;  %s249_s30 = scalar_lea.sflag (!%p835_p9), [#allocation4], %s248_s26 }
  0x40   : > { %s252_s5 = scalar_lea.vmem (!%p835_p9), [#allocation3], %s865_s28 }
  0x43   : > { %691 = dma.done.wait (%p796_p8), %s249_s30, 128  }
  0x44   : > { %693 = vsyncadd (%p796_p8), %s249_s30, 4294967168  ;;  %s257_s29 = sand.u32 1, %s781_s18   ;;  %s261_s21 = scalar_lea.vmem [#allocation6], %s865_s28 }
  0x45   : > { %s258_s9 = scalar_lea.sflag [#allocation7], %s257_s29 }
  0x46   : > { %695 = dma.done.wait (%p796_p8), %s258_s9, 256  }
  0x47   : > { %697 = vsyncadd (%p796_p8), %s258_s9, 4294967040  ;;  %s270_s7 = scalar_lea.vmem [#allocation8], %s865_s28  ;;  %p475_p11 = scmp.ne.s32.totalorder %s716_s15, 0 }
  0x49   : > { %313 = sbr.rel (%p475_p11) target bundleno = 80 (0x50), region = 48 }
  0x4e   : > { %vm314_vm0 = vcmask 785408   ;;  %v729_v0 = vmov 0.0  }
  0x4f   : > { %315 = vst.msk [vmem:[#allocation2] sm:$0xff] %vm314_vm0, %v729_v0 }
  0x50 PF: > { %v316_v1 = vld [vmem:[%s252_s5] sm:$0xff]  ;;  %v317_v3 = vld [vmem:[%s261_s21] sm:$0xff]  ;;  %s476_s11 = sshll.u32 %s716_s15, 3  ;;  %v332_v6 = vlaneseq  ;;  %vm730_vm2 = vmmov 1   ;;  %vm341_vm5 = vcmask 785408   ;;  %p477_p8 = scmp.ne.s32.totalorder %s716_s15, 2 }
  0x51   : > { %v321_v2 = vand.u32 2147483647, %v316_v1  ;;  %v319_v4 = vsub.f32 %v316_v1, %v317_v3  ;;  %s331_s23 = ssub.s32 19, %s476_s11  ;;  %v318_v11 = vld [vmem:[%s270_s7] sm:$0xff] }
  0x52   : > { %v333_v9 = vshrl.u32 %v332_v6, 7  ;;  %v334_v10 = vstv %s331_s23 }
  0x53   : > { %556 = vrcp.f32 %v321_v2  ;;  %v320_v5 = vand.u32 2147483647, %v319_v4 }
  0x54   : > { %vm335_vm4 = vcmp.lt.s32.totalorder %v333_v9, %v334_v10 }
  0x56   : > { %v339_v14 = vld [vmem:[#allocation2] sm:$0xff] }
  0x60   : > { %v557_v7 = vpop.eup %556 }
  0x61   : > { %v323_v8 = vmul.f32 %v557_v7, %v320_v5 }
  0x63   : > { %vm324_vm1 = vweird.f32 %v323_v8 }
  0x64   : > { %vm325_vm3 = vmxor %vm324_vm1, %vm730_vm2 }
  0x65   : > { %v326_v12 = vsel %vm325_vm3, %v323_v8, 0.0 }
  0x66   : > { %v327_v13 = vmul.f32 %v326_v12, %v318_v11 }
  0x67   : > { %346 = sbr.rel (%p477_p8) target bundleno = 116 (0x74), region = 52 }
  0x68   : > { %v338_v15 = vsel %vm335_vm4, %v327_v13, 0.0 }
  0x69   : > { %v340_v16 = vadd.f32 %v339_v14, %v338_v15 }
  0x6b   : > { %342 = vst.msk [vmem:[#allocation2] sm:$0xff] %vm341_vm5, %v340_v16 }
  0x72   : > { %v347_v17 = vld [vmem:[#allocation2] sm:$0xff] }
  0x73   : > { %348 = vst.msk [vmem:[#allocation9] sm:$0xff] %vm341_vm5, %v347_v17 }
  0x74 PF: > { %p503_p13 = scmp.eq.s32.totalorder %s781_s18, 2  ;;  %s731_s25 = smov [#allocation9]  }
  0x75   : > { %s358_s12 = sshll.u32 %s731_s25, 4  ;;  %s359_s12 = int_to_ptr.vmem [resolvable:$true] %s358_s12 }
  0x76   : > { %s642_s20 = scalar_lea.vmem %s359_s12, 128  ;;  %p649_p4 = scmp.lt.s32.totalorder %s359_s12, %s359_s12 }
  0x77   : > { %p643_p9 = scmp.ne.s32.totalorder %s359_s12, %s642_s20  ;;  %p650_p5 = scmp.lt.s32.totalorder %s642_s20, %s642_s20 }
  0x79   : > { %p644_p2 = pnand %p643_p9, %p503_p13  ;;  %p651_p6 = por %p650_p5, %p649_p4 }
  0x7b   : > { %p645_p3 = pneg %p644_p2 }
  0x7d   : > { %p652_p7 = pnand %p651_p6, %p645_p3 }
  0x7f   : > { %655 = shalt.err (!%p652_p7)
}
  0x80   : > { %489 = dma.vmem_to_hbm [thread:$0]  (%p503_p13), %s359_s12, 128, %s915_s3, [#allocation5]  }
  0x81   : > { %699 = dma.done.wait (%p503_p13), [#allocation5], 128  }
  0x82   : > { %701 = vsyncadd (%p503_p13), [#allocation5], 4294967168 }
  0x83 PF: > { %s20_s17 = sadd.s32 1, %s724_s17   ;;  %s919_s12 = smov %s708_s13 }
  0x84   : > { %p17_p10 = scmp.ge.s32.totalorder %s20_s17, 5   ;;  %s920_s13 = smov %s712_s14 }
  0x85   : > { %s921_s14 = smov %s805_s27  ;;  %s922_s15 = smov %s720_s16 }
  0x86   : > { %s923_s16 = smov %s925_s19  ;;  %19 = sbr.rel (!%p17_p10) target bundleno = 7 (0x7), region = 102 }
  0x8b   :  { %371 = vsyncpa [#allocation4], 1 }
  0x8c   :  { %373 = vsyncpa [#allocation4 + $0x1], 1 }
  0x8d   :  { %374 = vsyncpa [#allocation7], 1 }
  0x8e   :  { %376 = vsyncpa [#allocation7 + $0x1], 1 }
  0x8f   :  { %377 = vsyncpa [#allocation5], 1 }
  0x90   :  { %379 = vsyncpa [#allocation5 + $0x1], 1 }

</bundles_post_ra>
